<compile_context>
chip_gen: v7x
topology: tpu7x:2x2x1
jax: 0.10.0
libtpu: 0.0.40
codegen_flags: <defaults>
</compile_context>

<pallas_src>
import functools

import jax
import jax.numpy as jnp
from jax.experimental import pallas as pl
from jax.experimental.pallas import tpu as pltpu

_LANE = 128


def _round_up(a, b):
    return ((a + b - 1) // b) * b


@functools.lru_cache(maxsize=1)
def _device_info():
    """Generation-aware tuning knobs for an HBM-bandwidth-bound streaming op."""
    try:
        kind = jax.devices()[0].device_kind.lower()
    except Exception:
        kind = ""
    if "v7" in kind:
        # 6 MiB tiles -> 24 MiB pipelined (in+out, double-buffered): fits the
        # 32 MiB scoped default with ample headroom under 64 MiB physical VMEM.
        return {"block_bytes": 6 << 20, "two_tc": True, "bf16_vpu": True}
    if "v6" in kind:
        return {"block_bytes": 4 << 20, "two_tc": False, "bf16_vpu": True}
    if "v5p" in kind or "v4" in kind:
        # Megacore chips: 2 TensorCores, large VMEM.
        return {"block_bytes": 4 << 20, "two_tc": True, "bf16_vpu": False}
    if "v5" in kind:
        # v5e: raised from 2 MiB; needs the scoped-VMEM limit bumped (default
        # 16 MiB is hit exactly by 4 MiB x 2 arrays x 2 buffers).
        return {"block_bytes": 4 << 20, "two_tc": False, "bf16_vpu": False}
    return {"block_bytes": 2 << 20, "two_tc": False, "bf16_vpu": False}


def _make_kernel(compute_dtype):
    def _drelu_kernel(slopes_ref, x_ref, o_ref):
        # slopes_ref: SMEM (2,) float32 -> [slope_p, slope_n]
        sp = slopes_ref[0].astype(compute_dtype)
        nsn = (-slopes_ref[1]).astype(compute_dtype)
        x = x_ref[...].astype(compute_dtype)        # no-op when dtypes match
        # out = x * (sp if x >= 0 else -sn)  ==  sp*relu(x) + sn*relu(-x)
        # (>= keeps +0.0 on the slope_p branch, matching PyTorch's +0.0 output)
        o_ref[...] = (x * jnp.where(x >= 0, sp, nsn)).astype(o_ref.dtype)

    return _drelu_kernel


def _drelu_jnp(x, slope_p, slope_n, out_dtype):
    xf = x.astype(jnp.float32)
    out = slope_p * jnp.maximum(xf, 0.0) + slope_n * jnp.maximum(-xf, 0.0)
    return out.astype(out_dtype)


def drelu(x, slope_p, slope_n, *, small_fallback_bytes=64 * 1024, donate_x=False):
    """Elementwise DReLU (slope_p*relu(x) + slope_n*relu(-x)) via a Pallas TPU kernel."""
    orig_shape = x.shape
    dtype = x.dtype
    # PyTorch promotes integer tensors against the float32 parameters.
    out_dtype = dtype if jnp.issubdtype(dtype, jnp.floating) else jnp.float32
    sp = jnp.asarray(slope_p, jnp.float32)
    sn = jnp.asarray(slope_n, jnp.float32)

    n = int(x.size)
    itemsize = jnp.dtype(dtype).itemsize
    ragged = (n % _LANE) != 0

    # Tiny or lane-ragged inputs: a plain fused XLA elementwise op already runs
    # at HBM roofline with exactly one read + one write; the previous ragged
    # path (pad + kernel + slice-back) tripled HBM traffic, and a custom-call
    # launch dominates for a few-KiB tensor.  (Also covers n == 0.)
    if n == 0 or ragged or n * itemsize < small_fallback_bytes:
        return _drelu_jnp(x, sp, sn, out_dtype).reshape(orig_shape)

    info = _device_info()
    # Sublane granularity per vreg: 8 rows for 4-byte, 16 for 2-byte, 32 for 1-byte.
    sub = max(8, 32 // itemsize)

    rows = n // _LANE
    x2d = x.reshape(rows, _LANE)  # lane-dense slab; contiguous reshape, no pad copy

    # Row tile: as large as the generation target allows, multiple of `sub`.
    target_tr = max(sub, (info["block_bytes"] // (_LANE * itemsize)) // sub * sub)
    if rows <= target_tr:
        if info["two_tc"] and rows >= 2 * sub:
            # Exactly 2 even grid steps so both TensorCores stream half the rows.
            tr = _round_up(pl.cdiv(rows, 2), sub)
        else:
            # Single-TC chips: one full-extent block; splitting would only add
            # a ~0.35 us grid step + DMA issue with no parallelism benefit.
            tr = rows
    else:
        tr = target_tr
        if info["two_tc"]:
            # Avoid small odd step counts (e.g. 3 -> 2:1 TC imbalance on megacore).
            steps = pl.cdiv(rows, tr)
            if 1 < steps < 8 and steps % 2 == 1:
                tr = _round_up(pl.cdiv(rows, steps + 1), sub)
    grid = (pl.cdiv(rows, tr),)

    # in + out, double-buffered; raise the scoped-VMEM limit so larger tiles
    # (notably 4 MiB on v5e, whose default scoped limit is 16 MiB) always fit.
    pipelined_bytes = tr * _LANE * itemsize * 2 * 2
    vmem_limit = int(max(32 << 20, pipelined_bytes + (8 << 20)))

    # Sub-32-bit inputs compute in their own dtype on chips with a bf16 VPU
    # (one packed vreg, no cast passes); otherwise compute in f32.
    if info["bf16_vpu"] and dtype == jnp.bfloat16:
        compute_dtype = jnp.bfloat16
    else:
        compute_dtype = jnp.float32

    slopes = jnp.stack([sp, sn])  # (2,) float32 scalars, live in SMEM

    out2d = pl.pallas_call(
        _make_kernel(compute_dtype),
        out_shape=jax.ShapeDtypeStruct((rows, _LANE), out_dtype),
        grid=grid,
        in_specs=[
            pl.BlockSpec(memory_space=pltpu.SMEM),         # slopes (2,) scalars
            pl.BlockSpec((tr, _LANE), lambda i: (i, 0)),   # x tile
        ],
        out_specs=pl.BlockSpec((tr, _LANE), lambda i: (i, 0)),
        compiler_params=pltpu.CompilerParams(
            dimension_semantics=("parallel",),
            vmem_limit_bytes=vmem_limit,
        ),
        # Callers that can donate x avoid allocating a second activation-sized
        # HBM buffer (bytes moved stay one read + one write per element).
        input_output_aliases=({1: 0} if (donate_x and out_dtype == dtype) else {}),
    )(slopes, x2d)

    return out2d.reshape(orig_shape)


if __name__ == "__main__":
    key = jax.random.PRNGKey(0)

    # Parameters, initialized exactly as in DReLU.__init__
    slope_p = jnp.float32(1.0)
    slope_n = jnp.float32(0.0)

    # Module-consistent small NCHW input (batch=2, channels=4, spatial=16).
    x = jax.random.normal(key, (2, 4, 16, 16), dtype=jnp.float32)

    # Force the Pallas path even at this small size (the default heuristic
    # would short-circuit such a tiny tensor to the fused jnp expression).
    out = jax.block_until_ready(drelu(x, slope_p, slope_n, small_fallback_bytes=0))
    ref = slope_p * jnp.maximum(x, 0.0) + slope_n * jnp.maximum(-x, 0.0)
    assert out.shape == x.shape and out.dtype == x.dtype
    assert jnp.allclose(out, ref, atol=1e-6), "mismatch vs reference (init slopes)"

    # Nonzero negative slope (exercises both terms), still on the Pallas path.
    sp2, sn2 = jnp.float32(0.7), jnp.float32(0.3)
    out2 = jax.block_until_ready(drelu(x, sp2, sn2, small_fallback_bytes=0))
    ref2 = sp2 * jnp.maximum(x, 0.0) + sn2 * jnp.maximum(-x, 0.0)
    assert jnp.allclose(out2, ref2, atol=1e-6), "mismatch vs reference (learned slopes)"

    # Larger bf16 activation: default heuristics -> Pallas kernel, in-dtype
    # compute on v6e/v7x, f32 compute on v5e.
    xb = jax.random.normal(jax.random.PRNGKey(1), (2, 8, 64, 64), dtype=jnp.bfloat16)
    outb = jax.block_until_ready(drelu(xb, sp2, sn2))
    xbf = xb.astype(jnp.float32)
    refb = sp2 * jnp.maximum(xbf, 0.0) + sn2 * jnp.maximum(-xbf, 0.0)
    assert outb.shape == xb.shape and outb.dtype == jnp.bfloat16
    assert jnp.allclose(outb.astype(jnp.float32), refb, atol=5e-2, rtol=5e-2), \
        "mismatch vs reference (bf16)"

    # Lane-ragged shape takes the fused-jnp fallback (no pad/slice round trips).
    xr = jax.random.normal(jax.random.PRNGKey(2), (2, 3, 5, 7), dtype=jnp.float32)
    outr = jax.block_until_ready(drelu(xr, sp2, sn2))
    refr = sp2 * jnp.maximum(xr, 0.0) + sn2 * jnp.maximum(-xr, 0.0)
    assert jnp.allclose(outr, refr, atol=1e-6), "mismatch vs reference (ragged)"

    print("KERNEL_OK")
</pallas_src>

<mosaic_0001>
module attributes {stable_mosaic.version = 11 : i64} {
  func.func @_drelu_kernel(%arg0: i32, %arg1: memref<2xf32, #tpu.memory_space<smem>>, %arg2: memref<16x128xf32, #tpu.memory_space<vmem>>, %arg3: memref<16x128xf32, #tpu.memory_space<vmem>>) attributes {dimension_semantics = [#tpu.dimension_semantics<parallel>], iteration_bounds = array<i64: 1>, scalar_prefetch = 0 : i64, scratch_operands = 0 : i64, tpu.core_type = #tpu.core_type<tc>, window_params = [{transform_indices = @transform_0, window_bounds = array<i64: 2>}, {transform_indices = @transform_1, window_bounds = array<i64: 16, 128>}, {transform_indices = @transform_2, window_bounds = array<i64: 16, 128>}]} {
    %c0 = arith.constant 0 : index
    %0 = memref.load %arg1[%c0] : memref<2xf32, #tpu.memory_space<smem>>
    %c1 = arith.constant 1 : index
    %1 = memref.load %arg1[%c1] : memref<2xf32, #tpu.memory_space<smem>>
    %cst = arith.constant 0.000000e+00 : f32
    %2 = arith.subf %cst, %1 : f32
    %c0_0 = arith.constant 0 : index
    %c0_1 = arith.constant 0 : index
    %3 = vector.load %arg2[%c0_0, %c0_1] : memref<16x128xf32, #tpu.memory_space<vmem>>, vector<16x128xf32>
    %cst_2 = arith.constant 0.000000e+00 : f32
    %4 = vector.broadcast %cst_2 : f32 to vector<16x128xf32>
    %5 = arith.cmpf oge, %3, %4 : vector<16x128xf32>
    %6 = vector.broadcast %0 : f32 to vector<16x128xf32>
    %7 = vector.broadcast %2 : f32 to vector<16x128xf32>
    %8 = arith.select %5, %6, %7 : vector<16x128xi1>, vector<16x128xf32>
    %9 = arith.mulf %3, %8 : vector<16x128xf32>
    %c0_3 = arith.constant 0 : index
    %c0_4 = arith.constant 0 : index
    %10 = vector.load %arg3[%c0_3, %c0_4] : memref<16x128xf32, #tpu.memory_space<vmem>>, vector<16x128xf32>
    tpu.vector_store %arg3[%c0_3, %c0_4], %9 {strides = array<i32>} : memref<16x128xf32, #tpu.memory_space<vmem>>, vector<16x128xf32>,
    return
  }
  func.func @transform_0(%arg0: i32) -> i32 {
    %c0_i32 = arith.constant 0 : i32
    %c0_i32_0 = arith.constant 0 : i32
    return %c0_i32 : i32
  }
  func.func @transform_1(%arg0: i32) -> (i32, i32) {
    %c0_i32 = arith.constant 0 : i32
    %c0_i32_0 = arith.constant 0 : i32
    return %arg0, %c0_i32 : i32, i32
  }
  func.func @transform_2(%arg0: i32) -> (i32, i32) {
    %c0_i32 = arith.constant 0 : i32
    %c0_i32_0 = arith.constant 0 : i32
    return %arg0, %c0_i32 : i32, i32
  }
}

</mosaic_0001>

<bundles_post_ra>
// kernel: tpu_custom_call.1
= control target key start
LH: loop header
LB: loop body
LE: loop exit
PB: predicated region body
PF: predicated region fallthrough
CT: control target
= control target key end

     0   :  { %7 = vsyncpa [#allocation5], 0  ;;  %s198_s0 = inlined_call_operand.hbm [shape: f32[2], index: 0, kind: input, shape index: {}]   ;;  %s199_s1 = inlined_call_operand.hbm [shape: f32[16,128], index: 1, kind: input, shape index: {}]   ;;  %s200_s2 = inlined_call_operand.hbm [shape: f32[16,128], index: 2, kind: output, shape index: {}]  }
   0x1   :  { %8 = vsyncpa [#allocation3], 0 }
   0x2   :  { %9 = vsyncpa [#allocation4], 0  ;;  %s76_s11 = scalar_lea.hbm %s198_s0, 16 }
   0x3   :  { %p77_p0 = scmp.ne.s32.totalorder %s198_s0, %s76_s11  ;;  %p80_p1 = scmp.lt.u32.totalorder %s76_s11, %s198_s0 }
   0x5   :  { %p82_p2 = pnand %p80_p1, %p77_p0 }
   0x7   :  { %85 = shalt.err (!%p82_p2)
}
   0x8   :  { %s136_s16 = smov [#allocation2]   ;;  %s137_s19 = smov [#allocation6]  }
   0x9   :  { %17 = dma.hbm_to_smem %s198_s0, 16, %s136_s16, [#allocation5]  }
   0xa   :  { %s23_s20 = sshll.u32 %s137_s19, 4  ;;  %s86_s23 = scalar_lea.hbm %s199_s1, 256  ;;  %s24_s20 = int_to_ptr.vmem [resolvable:$true] %s23_s20 }
   0xb   :  { %p87_p3 = scmp.ne.s32.totalorder %s199_s1, %s86_s23  ;;  %p90_p4 = scmp.lt.u32.totalorder %s86_s23, %s199_s1 }
   0xd   :  { %p92_p5 = pnand %p90_p4, %p87_p3 }
   0xf   :  { %95 = shalt.err (!%p92_p5)
}
  0x10   :  { %s96_s28 = scalar_lea.vmem %s24_s20, 256  ;;  %p101_p7 = scmp.lt.s32.totalorder %s24_s20, %s24_s20 }
  0x11   :  { %p97_p6 = scmp.ne.s32.totalorder %s24_s20, %s96_s28  ;;  %p102_p8 = scmp.lt.s32.totalorder %s96_s28, %s96_s28 }
  0x13   :  { %p103_p9 = por %p102_p8, %p101_p7 }
  0x15   :  { %p104_p10 = pnand %p103_p9, %p97_p6 }
  0x17   :  { %107 = shalt.err (!%p104_p10)
}
  0x18   :  { %s138_s0 = smov 128   ;;  %s139_s29 = smov 8  }
  0x19   :  { %29 = dma.hbm_to_vmem [thread:$0]  %s199_s1, 256, %s24_s20, [#allocation3], %s138_s0, %s138_s0, %s139_s29  }
  0x1a   :  { %130 = dma.done.wait [#allocation5], 16  }
  0x1b   :  { %131 = vsyncadd [#allocation5], 4294967280 }
  0x1c   :  { %132 = dma.done.wait [#allocation3], 256  }
  0x1d   :  { %133 = vsyncadd [#allocation3], 4294967040 }
  0x1e   :  { %36 = sfence }
  0x1f   :  { %s37_s4 = sld [smem:[#allocation2]]  ;;  %s70_s5 = sld [smem:[#allocation2 + $0x1]]  ;;  %v40_v0 = vld [vmem:[#allocation6] sm:$0xff]  ;;  %v41_v1 = vld [vmem:[#allocation6 + $0x8] sm:$0xff] }
  0x20   :  { %vm42_vm0 = vcmp.ge.f32.partialorder %v40_v0, 0.0  ;;  %vm43_vm1 = vcmp.ge.f32.partialorder %v41_v1, 0.0  ;;  %s140_s7 = smov [#allocation7]  }
  0x21   :  { %s57_s8 = sshll.u32 %s140_s7, 4  ;;  %s58_s8 = int_to_ptr.vmem [resolvable:$true] %s57_s8 }
  0x22   :  { %s108_s1 = scalar_lea.vmem %s58_s8, 256  ;;  %p113_p12 = scmp.lt.s32.totalorder %s58_s8, %s58_s8 }
  0x23   :  { %p109_p11 = scmp.ne.s32.totalorder %s58_s8, %s108_s1  ;;  %p114_p13 = scmp.lt.s32.totalorder %s108_s1, %s108_s1 }
  0x25   :  { %s39_s6 = ssub.f32 0.0, %s70_s5  ;;  %v44_v2 = vstv %s37_s4  ;;  %p115_p0 = por %p114_p13, %p113_p12 }
  0x27   :  { %v45_v3 = vstv %s39_s6  ;;  %p116_p1 = pnand %p115_p0, %p109_p11 }
  0x28   :  { %v46_v4 = vsel %vm42_vm0, %v44_v2, %v45_v3  ;;  %v47_v5 = vsel %vm43_vm1, %v44_v2, %v45_v3 }
  0x29   :  { %v48_v6 = vmul.f32 %v46_v4, %v40_v0  ;;  %v49_v7 = vmul.f32 %v47_v5, %v41_v1 }
  0x2b   :  { %50 = vst [vmem:[#allocation7] sm:$0xff] %v48_v6  ;;  %51 = vst [vmem:[#allocation7 + $0x8] sm:$0xff] %v49_v7 }
  0x2c   :  { %119 = shalt.err (!%p116_p1)
}
  0x2d   :  { %s120_s11 = scalar_lea.hbm %s200_s2, 256 }
  0x2e   :  { %p121_p2 = scmp.ne.s32.totalorder %s200_s2, %s120_s11  ;;  %p124_p3 = scmp.lt.u32.totalorder %s120_s11, %s200_s2 }
  0x30   :  { %p126_p4 = pnand %p124_p3, %p121_p2 }
  0x32   :  { %129 = shalt.err (!%p126_p4)
}
  0x33   :  { %63 = dma.vmem_to_hbm [thread:$0]  %s58_s8, 256, %s200_s2, [#allocation4], %s138_s0, %s138_s0, %s139_s29  }
  0x34   :  { %134 = dma.done.wait [#allocation4], 256  }
  0x35   :  { %135 = vsyncadd [#allocation4], 4294967040 }
  0x36   :  { %67 = vsyncpa [#allocation3], 1 }
  0x37   :  { %68 = vsyncpa [#allocation4], 1 }
  0x38   :  { %69 = vsyncpa [#allocation5], 1 }

</bundles_post_ra>
